<compile_context>
chip_gen: v7x
topology: tpu7x:2x2x1
jax: 0.10.0
libtpu: 0.0.40
codegen_flags: <defaults>
</compile_context>

<pallas_src>
import numpy as np
import jax
import jax.numpy as jnp
from jax.experimental import pallas as pl
from jax.experimental.pallas import tpu as pltpu

# ------------------------- configuration (small shapes) -------------------------
N = 2            # batch
CHANNEL = 128    # constant-input channels (StyleGAN2 head style, kept small)
SIZE = 4         # spatial size (module default)
H = W = SIZE
LANES = 128
TOTAL = CHANNEL * H * W          # 2048
R = TOTAL // LANES               # 16 sublane rows -> 2 f32 vregs per sample


# ------------------------------- Pallas kernel ----------------------------------
def _constant_input_kernel(const_ref, o_ref):
    # const_ref: (R, LANES) f32 learned-constant slab (lane-dense).
    # o_ref:     (N, R, LANES) f32 output — broadcast along the batch dim and
    #            store the whole lane-dense block in one unmasked write.
    o_ref[...] = jnp.broadcast_to(const_ref[...][None, :, :], o_ref.shape)


# ------------------------------- wrapper (glue) ----------------------------------
def constant_input_forward(x, const_param):
    """Pallas ConstantInput.forward.

    Args:
        x: (N, C, ...) tensor — only its batch size is used (matches PyTorch).
        const_param: (1, CHANNEL, H, W) learned constant.
    Returns:
        (N, CHANNEL, H, W) float32, == const_param repeated along batch.
    """
    n = x.shape[0]
    _, c, h, w = const_param.shape
    total = c * h * w
    # Lane-dense flat layout: last dim = 128, sublane rows a multiple of 8.
    assert total % LANES == 0 and (total // LANES) % 8 == 0, \
        "constant size must flatten to an (8,128)-aligned slab"
    r = total // LANES
    const_2d = const_param.reshape(r, LANES).astype(jnp.float32)   # C-order flatten

    out_flat = pl.pallas_call(
        _constant_input_kernel,
        out_shape=jax.ShapeDtypeStruct((n, r, LANES), jnp.float32),
        grid_spec=pltpu.PrefetchScalarGridSpec(
            num_scalar_prefetch=0,
            grid=(1,),                                             # single step
            in_specs=[pl.BlockSpec((r, LANES), lambda i: (0, 0))],
            out_specs=pl.BlockSpec((n, r, LANES), lambda i: (0, 0, 0)),
        ),
        compiler_params=pltpu.CompilerParams(dimension_semantics=("arbitrary",)),
    )(const_2d)

    # Same element order as torch's repeat(batch,1,1,1): pure reshape, no transpose.
    return out_flat.reshape(n, c, h, w)


# ------------------------- pure-JAX reference (PyTorch math) ---------------------
def reference_forward(x, const_param):
    n = x.shape[0]
    _, c, h, w = const_param.shape
    return jnp.broadcast_to(const_param, (n, c, h, w)).astype(jnp.float32)


# -------------------------------------- main -------------------------------------
if __name__ == "__main__":
    key = jax.random.PRNGKey(0)
    k_const, k_x = jax.random.split(key, 2)

    # nn.Parameter(torch.randn(1, channel, size, size))
    const_param = jax.random.normal(k_const, (1, CHANNEL, H, W), jnp.float32)
    # Incoming feature map: only its batch size matters.
    x = jax.random.normal(k_x, (N, CHANNEL, H, W), jnp.float32)

    out = constant_input_forward(x, const_param)
    out = jax.block_until_ready(out)

    ref = jax.block_until_ready(reference_forward(x, const_param))
    np.testing.assert_allclose(np.asarray(out), np.asarray(ref), rtol=0.0, atol=0.0)

    print("KERNEL_OK")
</pallas_src>

<mosaic_0001>
module attributes {stable_mosaic.version = 11 : i64} {
  func.func @_constant_input_kernel(%arg0: i32, %arg1: memref<16x128xf32, #tpu.memory_space<vmem>>, %arg2: memref<2x16x128xf32, #tpu.memory_space<vmem>>) attributes {dimension_semantics = [#tpu.dimension_semantics<arbitrary>], iteration_bounds = array<i64: 1>, scalar_prefetch = 0 : i64, scratch_operands = 0 : i64, tpu.core_type = #tpu.core_type<tc>, window_params = [{pipeline_mode = #tpu.pipeline_mode<synchronous>, transform_indices = @transform_0, window_bounds = array<i64: 16, 128>}, {pipeline_mode = #tpu.pipeline_mode<synchronous>, transform_indices = @transform_1, window_bounds = array<i64: 2, 16, 128>}]} {
    %c0 = arith.constant 0 : index
    %c0_0 = arith.constant 0 : index
    %0 = vector.load %arg1[%c0, %c0_0] : memref<16x128xf32, #tpu.memory_space<vmem>>, vector<16x128xf32>
    %1 = vector.shape_cast %0 : vector<16x128xf32> to vector<1x16x128xf32>
    %2 = vector.shape_cast %1 : vector<1x16x128xf32> to vector<1x16x128xf32>
    %3 = vector.broadcast %2 : vector<1x16x128xf32> to vector<2x16x128xf32>
    %c0_1 = arith.constant 0 : index
    %c0_2 = arith.constant 0 : index
    %c0_3 = arith.constant 0 : index
    %4 = vector.load %arg2[%c0_1, %c0_2, %c0_3] : memref<2x16x128xf32, #tpu.memory_space<vmem>>, vector<2x16x128xf32>
    tpu.vector_store %arg2[%c0_1, %c0_2, %c0_3], %3 {strides = array<i32>} : memref<2x16x128xf32, #tpu.memory_space<vmem>>, vector<2x16x128xf32>,
    return
  }
  func.func @transform_0(%arg0: i32) -> (i32, i32) {
    %c0_i32 = arith.constant 0 : i32
    %c0_i32_0 = arith.constant 0 : i32
    %c0_i32_1 = arith.constant 0 : i32
    return %c0_i32, %c0_i32_0 : i32, i32
  }
  func.func @transform_1(%arg0: i32) -> (i32, i32, i32) {
    %c0_i32 = arith.constant 0 : i32
    %c0_i32_0 = arith.constant 0 : i32
    %c0_i32_1 = arith.constant 0 : i32
    %c0_i32_2 = arith.constant 0 : i32
    return %c0_i32, %c0_i32_0, %c0_i32_1 : i32, i32, i32
  }
}

</mosaic_0001>

<bundles_post_ra>
// kernel: tpu_custom_call.1
= control target key start
LH: loop header
LB: loop body
LE: loop exit
PB: predicated region body
PF: predicated region fallthrough
CT: control target
= control target key end

     0   :  { %6 = vsyncpa [#allocation3], 0  ;;  %s136_s0 = inlined_call_operand.hbm [shape: f32[16,128], index: 0, kind: input, shape index: {}]   ;;  %s137_s1 = inlined_call_operand.hbm [shape: f32[2,16,128], index: 1, kind: output, shape index: {}]  }
   0x1   :  { %7 = vsyncpa [#allocation4], 0  ;;  %s98_s6 = smov [#allocation2]   ;;  %s50_s10 = scalar_lea.hbm %s136_s0, 256 }
   0x2   :  { %s13_s7 = sshll.u32 %s98_s6, 4  ;;  %p51_p0 = scmp.ne.s32.totalorder %s136_s0, %s50_s10  ;;  %s14_s7 = int_to_ptr.vmem [resolvable:$true] %s13_s7 }
   0x3   :  { %p54_p1 = scmp.lt.u32.totalorder %s50_s10, %s136_s0 }
   0x5   :  { %p56_p2 = pnand %p54_p1, %p51_p0 }
   0x7   :  { %59 = shalt.err (!%p56_p2)
}
   0x8   :  { %s60_s15 = scalar_lea.vmem %s14_s7, 256  ;;  %p65_p4 = scmp.lt.s32.totalorder %s14_s7, %s14_s7 }
   0x9   :  { %p61_p3 = scmp.ne.s32.totalorder %s14_s7, %s60_s15  ;;  %p66_p5 = scmp.lt.s32.totalorder %s60_s15, %s60_s15 }
   0xb   :  { %p67_p6 = por %p66_p5, %p65_p4 }
   0xd   :  { %p68_p7 = pnand %p67_p6, %p61_p3 }
   0xf   :  { %71 = shalt.err (!%p68_p7)
}
  0x10   :  { %s99_s16 = smov 128   ;;  %s100_s17 = smov 8  }
  0x11   :  { %19 = dma.hbm_to_vmem [thread:$0]  %s136_s0, 256, %s14_s7, [#allocation3], %s99_s16, %s99_s16, %s100_s17  }
  0x12   :  { %94 = dma.done.wait [#allocation3], 256  }
  0x13   :  { %95 = vsyncadd [#allocation3], 4294967040  ;;  %s101_s20 = smov [#allocation5]   ;;  %v23_v0 = vld [vmem:[#allocation2] sm:$0xff]  ;;  %v24_v1 = vld [vmem:[#allocation2 + $0x8] sm:$0xff] }
  0x14   :  { %s34_s21 = sshll.u32 %s101_s20, 4  ;;  %25 = vst [vmem:[#allocation5] sm:$0xff] %v23_v0  ;;  %27 = vst [vmem:[#allocation5 + $0x10] sm:$0xff] %v23_v0  ;;  %s35_s21 = int_to_ptr.vmem [resolvable:$true] %s34_s21 }
  0x15   :  { %26 = vst [vmem:[#allocation5 + $0x8] sm:$0xff] %v24_v1  ;;  %28 = vst [vmem:[#allocation5 + $0x18] sm:$0xff] %v24_v1  ;;  %s72_s22 = scalar_lea.vmem %s35_s21, 512  ;;  %p77_p9 = scmp.lt.s32.totalorder %s35_s21, %s35_s21 }
  0x16   :  { %p73_p8 = scmp.ne.s32.totalorder %s35_s21, %s72_s22  ;;  %p78_p10 = scmp.lt.s32.totalorder %s72_s22, %s72_s22 }
  0x18   :  { %p79_p11 = por %p78_p10, %p77_p9 }
  0x1a   :  { %p80_p12 = pnand %p79_p11, %p73_p8 }
  0x1c   :  { %83 = shalt.err (!%p80_p12)
}
  0x1d   :  { %s84_s24 = scalar_lea.hbm %s137_s1, 512 }
  0x1e   :  { %p85_p13 = scmp.ne.s32.totalorder %s137_s1, %s84_s24  ;;  %p88_p0 = scmp.lt.u32.totalorder %s84_s24, %s137_s1 }
  0x20   :  { %p90_p1 = pnand %p88_p0, %p85_p13 }
  0x22   :  { %93 = shalt.err (!%p90_p1)
}
  0x23   :  { %40 = dma.vmem_to_hbm [thread:$0]  %s35_s21, 512, %s137_s1, [#allocation4], %s99_s16, %s99_s16, %s100_s17  }
  0x24   :  { %96 = dma.done.wait [#allocation4], 512  }
  0x25   :  { %97 = vsyncadd [#allocation4], 4294966784 }
  0x26   :  { %44 = vsyncpa [#allocation3], 1 }
  0x27   :  { %45 = vsyncpa [#allocation4], 1 }

</bundles_post_ra>
